<compile_context>
chip_gen: v6e
topology: v6e:2x2x1
jax: 0.10.0
libtpu: 0.0.40
codegen_flags: <defaults>
</compile_context>

<pallas_src>
import jax
import jax.numpy as jnp
from jax.experimental import pallas as pl
from jax.experimental.pallas import tpu as pltpu

LANES = 128
MAX_TILE_ROWS = 2048  # 2048 * 128 * 4 B = 1 MiB per f32 VMEM buffer (x and out)


def mlp_scalar_kernel(p_ref, x_ref, o_ref):
    # p_ref (SMEM, f32[4]): [w1 + 1, b1, w2, b2]  (residual folded into linear1)
    c1 = p_ref[0]
    b1 = p_ref[1]
    w2 = p_ref[2]
    b2 = p_ref[3]
    x = x_ref[...].astype(jnp.float32)
    v = jnp.maximum(x * c1 + b1, 0.0)                # linear1 + residual + relu
    o_ref[...] = (v * w2 + b2).astype(o_ref.dtype)   # linear2


def _ceil_to(a, m):
    return -(-a // m) * m


def _sublane_multiple(dtype):
    # packed-tile minimum along the sublane axis: 8 (f32) / 16 (bf16) / 32 (i8/fp8)
    return max(8, 32 // jnp.dtype(dtype).itemsize)


def _tensorcores_per_chip():
    # v7x has 2 TensorCores per chip sharing HBM; v5e/v6e have 1.
    try:
        kind = jax.devices()[0].device_kind.lower()
    except Exception:
        return 1
    return 2 if "v7" in kind else 1


def _choose_tiling(rows, sub, n_cores):
    """Pick (tile_rows, n_tiles) for a (rows, 128) array.

    Blocks are either the full array (no (8,128) divisibility constraint) or a
    (multiple-of-sub, 128) tile; a partial last block is fine (Pallas masks the
    out-of-bounds reads/writes)."""
    if n_cores <= 1 or rows <= sub:
        # Single TensorCore (v5e/v6e): extra grid steps are serial pipeline
        # overhead (~0.35 us each) with zero parallelism benefit -> biggest tile.
        if rows <= MAX_TILE_ROWS:
            return rows, 1                       # one full-array block
        return MAX_TILE_ROWS, pl.cdiv(rows, MAX_TILE_ROWS)
    # v7x megacore: even number of balanced tiles so neither core runs a tail.
    n_target = 2 * pl.cdiv(pl.cdiv(rows, MAX_TILE_ROWS), 2)
    tile_rows = min(MAX_TILE_ROWS, _ceil_to(pl.cdiv(rows, n_target), sub))
    return tile_rows, pl.cdiv(rows, tile_rows)


def mlp_forward(x, w1, b1, w2, b2):
    """x: [B, 1]; w1: [1, 1]; b1: [1]; w2: [1, 1]; b2: [1]  (PyTorch Linear layout)."""
    B, d_in = x.shape
    d_hidden = w1.shape[0]
    d_out = w2.shape[0]
    assert d_in == 1 and d_hidden == 1 and d_out == 1, (
        "This kernel specializes the module's dim_in = dim_hidden = dim_out = 1 case.")
    # TODO(synk): general feature dims would become a tiled MXU kernel; not
    # needed for this module.

    dtype = x.dtype
    sub = _sublane_multiple(dtype)
    rows = pl.cdiv(B, LANES)
    tile_rows, n_tiles = _choose_tiling(rows, sub, _tensorcores_per_chip())

    lane_total = rows * LANES
    if B == lane_total:
        x_tiles = x.reshape(rows, LANES)          # fast path: free bitcast, no copy
    else:
        x_tiles = jnp.pad(x.reshape(-1), (0, lane_total - B)).reshape(rows, LANES)

    # Scalars for SMEM; residual `v + t` folded into linear1's weight.
    params = jnp.concatenate([
        w1.reshape(1) + 1.0,
        b1.reshape(1),
        w2.reshape(1),
        b2.reshape(1),
    ]).astype(jnp.float32)

    out = pl.pallas_call(
        mlp_scalar_kernel,
        out_shape=jax.ShapeDtypeStruct((rows, LANES), dtype),
        grid=(n_tiles,),
        in_specs=[
            pl.BlockSpec(memory_space=pltpu.MemorySpace.SMEM),    # scalars
            pl.BlockSpec((tile_rows, LANES), lambda i: (i, 0)),   # x tile
        ],
        out_specs=pl.BlockSpec((tile_rows, LANES), lambda i: (i, 0)),
        compiler_params=pltpu.CompilerParams(
            dimension_semantics=("parallel",),
            vmem_limit_bytes=32 * 1024 * 1024,
        ),
    )(params, x_tiles)

    if B == lane_total:
        return out.reshape(B, d_out)              # fast path: free reshape
    return out.reshape(-1)[:B].reshape(B, d_out)


def init_params(key, dim_in, dim_hidden, dim_out):
    """Deterministic init mimicking torch.nn.Linear (uniform +/- 1/sqrt(fan_in))."""
    k1, k2, k3, k4 = jax.random.split(key, 4)
    bound1 = 1.0 / (dim_in ** 0.5)
    bound2 = 1.0 / (dim_hidden ** 0.5)
    w1 = jax.random.uniform(k1, (dim_hidden, dim_in), jnp.float32, -bound1, bound1)
    b1 = jax.random.uniform(k2, (dim_hidden,), jnp.float32, -bound1, bound1)
    w2 = jax.random.uniform(k3, (dim_out, dim_hidden), jnp.float32, -bound2, bound2)
    b2 = jax.random.uniform(k4, (dim_out,), jnp.float32, -bound2, bound2)
    return w1, b1, w2, b2


def reference_forward(x, w1, b1, w2, b2):
    v = x @ w1.T + b1
    v = v + x
    v = jnp.maximum(v, 0.0)
    return v @ w2.T + b2


if __name__ == "__main__":
    dim_in = dim_hidden = dim_out = 1

    key = jax.random.PRNGKey(0)
    w1, b1, w2, b2 = init_params(jax.random.fold_in(key, 0), dim_in, dim_hidden, dim_out)

    def check(batch, dtype, tol):
        kx = jax.random.fold_in(key, batch)
        x = jax.random.normal(kx, (batch, dim_in), jnp.float32).astype(dtype)
        out = jax.block_until_ready(mlp_forward(x, w1, b1, w2, b2))
        ref = reference_forward(x.astype(jnp.float32), w1, b1, w2, b2)
        assert out.shape == (batch, dim_out), (out.shape, batch)
        assert jnp.allclose(out.astype(jnp.float32), ref, atol=tol, rtol=tol), (
            batch, dtype, out, ref)

    check(8, jnp.float32, 1e-5)       # tiny batch: pad path, single full-array block
    check(256, jnp.float32, 1e-5)     # B % 128 == 0 fast path: zero-copy wrapper
    check(2500, jnp.float32, 1e-5)    # pad path; 2 balanced tiles (partial last) on v7x
    check(4096, jnp.bfloat16, 2e-2)   # dtype-faithful bf16 streaming (16-row sublane mult.)

    print("KERNEL_OK")
</pallas_src>

<mosaic_0001>
module attributes {stable_mosaic.version = 11 : i64} {
  func.func @mlp_scalar_kernel(%arg0: i32, %arg1: memref<4xf32, #tpu.memory_space<smem>>, %arg2: memref<1x128xf32, #tpu.memory_space<vmem>>, %arg3: memref<1x128xf32, #tpu.memory_space<vmem>>) attributes {dimension_semantics = [#tpu.dimension_semantics<parallel>], iteration_bounds = array<i64: 1>, scalar_prefetch = 0 : i64, scratch_operands = 0 : i64, tpu.core_type = #tpu.core_type<tc>, window_params = [{transform_indices = @transform_0, window_bounds = array<i64: 4>}, {transform_indices = @transform_1, window_bounds = array<i64: 1, 128>}, {transform_indices = @transform_2, window_bounds = array<i64: 1, 128>}]} {
    %c0 = arith.constant 0 : index
    %0 = memref.load %arg1[%c0] : memref<4xf32, #tpu.memory_space<smem>>
    %c1 = arith.constant 1 : index
    %1 = memref.load %arg1[%c1] : memref<4xf32, #tpu.memory_space<smem>>
    %c2 = arith.constant 2 : index
    %2 = memref.load %arg1[%c2] : memref<4xf32, #tpu.memory_space<smem>>
    %c3 = arith.constant 3 : index
    %3 = memref.load %arg1[%c3] : memref<4xf32, #tpu.memory_space<smem>>
    %c0_0 = arith.constant 0 : index
    %c0_1 = arith.constant 0 : index
    %4 = vector.load %arg2[%c0_0, %c0_1] : memref<1x128xf32, #tpu.memory_space<vmem>>, vector<1x128xf32>
    %5 = vector.broadcast %0 : f32 to vector<1x128xf32>
    %6 = arith.mulf %4, %5 : vector<1x128xf32>
    %7 = vector.broadcast %1 : f32 to vector<1x128xf32>
    %8 = arith.addf %6, %7 : vector<1x128xf32>
    %cst = arith.constant 0.000000e+00 : f32
    %9 = vector.broadcast %cst : f32 to vector<1x128xf32>
    %10 = arith.maximumf %8, %9 : vector<1x128xf32>
    %11 = vector.broadcast %2 : f32 to vector<1x128xf32>
    %12 = arith.mulf %10, %11 : vector<1x128xf32>
    %13 = vector.broadcast %3 : f32 to vector<1x128xf32>
    %14 = arith.addf %12, %13 : vector<1x128xf32>
    %c0_2 = arith.constant 0 : index
    %c0_3 = arith.constant 0 : index
    %15 = vector.load %arg3[%c0_2, %c0_3] : memref<1x128xf32, #tpu.memory_space<vmem>>, vector<1x128xf32>
    tpu.vector_store %arg3[%c0_2, %c0_3], %14 {strides = array<i32>} : memref<1x128xf32, #tpu.memory_space<vmem>>, vector<1x128xf32>,
    return
  }
  func.func @transform_0(%arg0: i32) -> i32 {
    %c0_i32 = arith.constant 0 : i32
    %c0_i32_0 = arith.constant 0 : i32
    return %c0_i32 : i32
  }
  func.func @transform_1(%arg0: i32) -> (i32, i32) {
    %c0_i32 = arith.constant 0 : i32
    %c0_i32_0 = arith.constant 0 : i32
    return %arg0, %c0_i32 : i32, i32
  }
  func.func @transform_2(%arg0: i32) -> (i32, i32) {
    %c0_i32 = arith.constant 0 : i32
    %c0_i32_0 = arith.constant 0 : i32
    return %arg0, %c0_i32 : i32, i32
  }
}

</mosaic_0001>

<bundles_post_ra>
// kernel: tpu_custom_call.1
= control target key start
LH: loop header
LB: loop body
LE: loop exit
PB: predicated region body
PF: predicated region fallthrough
CT: control target
= control target key end

     0   :  { %7 = vsyncpa [#allocation4], 0  ;;  %s116_s0 = inlined_call_operand.hbm [shape: f32[4], index: 0, kind: input, shape index: {}]   ;;  %s117_s1 = inlined_call_operand.vmem [shape: f32[1,128], index: 1, kind: input, shape index: {}]   ;;  %s118_s2 = inlined_call_operand.hbm [shape: f32[1,128], index: 2, kind: output, shape index: {}]  }
   0x1   :  { %8 = vsyncpa [#allocation3], 0  ;;  %s90_s9 = smov [#allocation2]  }
   0x2   :  { %16 = dma.hbm_to_smem %s116_s0, 16, %s90_s9, [#allocation4]  }
   0x3   :  { %86 = dma.done.wait [#allocation4], 16  }
   0x4   :  { %87 = vsyncadd [#allocation4], 4294967280 }
   0x5   :  { %22 = sfence }
   0x6   :  { %s23_s12 = sld [smem:[#allocation2]]  ;;  %v27_v0 = vld [vmem:[%s117_s1] sm:$0x1]  ;;  %s91_s18 = smov [#allocation5]  }
   0x7   :  { %s53_s13 = sld [smem:[#allocation2 + $0x1]]  ;;  %s44_s0 = sshll.u32 %s91_s18, 4  ;;  %s45_s0 = int_to_ptr.vmem [resolvable:$true] %s44_s0 }
   0x8   :  { %s54_s14 = sld [smem:[#allocation2 + $0x2]]  ;;  %s66_s19 = scalar_lea.vmem %s45_s0, 16 }
   0x9   :  { %s55_s15 = sld [smem:[#allocation2 + $0x3]]  ;;  %p67_p0 = scmp.ne.s32.totalorder %s45_s0, %s66_s19 }
   0xa   :  { %s70_s20 = scalar_lea.vmem %s45_s0, 32  ;;  %p71_p1 = scmp.lt.s32.totalorder %s45_s0, %s45_s0 }
   0xb   :  { %p72_p2 = scmp.lt.s32.totalorder %s70_s20, %s66_s19 }
   0xc   :  { %v28_v1 = vstv %s23_s12 }
   0xd   :  { %v29_v2 = vmul.f32 %v28_v1, %v27_v0  ;;  %v30_v3 = vstv %s53_s13  ;;  %p73_p3 = por %p72_p2, %p71_p1 }
   0xe   :  { %v33_v5 = vstv %s54_s14 }
   0xf   :  { %v31_v4 = vadd.f32 %v30_v3, %v29_v2  ;;  %v35_v7 = vstv %s55_s15  ;;  %p74_p4 = pnand %p73_p3, %p67_p0 }
  0x11   :  { %v32_v6 = vmax.f32 %v31_v4, 0.0 }
  0x13   :  { %v34_v8 = vmul.f32 %v33_v5, %v32_v6 }
  0x15   :  { %v36_v9 = vadd.f32 %v35_v7, %v34_v8 }
  0x17   :  { %37 = vst [vmem:[#allocation5] sm:$0x1] %v36_v9 }
  0x18   :  { %77 = shalt.err (!%p74_p4)
}
  0x19   :  { %47 = dma.vmem_to_hbm [thread:$0]  %s45_s0, 16, %s118_s2, [#allocation3]  }
  0x1a   :  { %88 = dma.done.wait [#allocation3], 16  }
  0x1b   :  { %89 = vsyncadd [#allocation3], 4294967280 }
  0x1c   :  { %51 = vsyncpa [#allocation3], 1 }
  0x1d   :  { %52 = vsyncpa [#allocation4], 1 }

</bundles_post_ra>
